<compile_context>
chip_gen: v5e
topology: v5e:2x2
jax: 0.10.0
libtpu: 0.0.40
codegen_flags: <defaults>
</compile_context>

<pallas_src>
import functools
import math

import jax
import jax.numpy as jnp
from jax import lax
from jax.experimental import pallas as pl
from jax.experimental.pallas import tpu as pltpu


# ---------------------------------------------------------------------------
# Fused kernel: conv1(+bn0) + leaky_relu + conv2(+bn1,col-pool folded) +
# skip conv(col-pool folded) + row pool, for B stacked images per grid step.
# ---------------------------------------------------------------------------
def _fused_block_kernel(x_ref, m1_ref, b1_ref, m2_ref, m3_ref, b23_ref, ph_ref,
                        o_ref, xpad_ref, hpad_ref,
                        *, B, H, KH, alpha, cdtype):
    pad_top = (KH - 1) // 2
    Hp = H + KH - 1                  # per-image band height (incl. zero halos)
    Q = B * Hp - (KH - 1)            # rows of the stacked 'valid' conv output

    # Zero ONLY the halo rows (top pad, inter-image separators, bottom pad).
    # Interiors are fully rewritten below; doing this every step keeps each
    # grid step self-contained when the batch axis is split across cores.
    halo_runs = []
    if pad_top > 0:
        halo_runs.append((0, pad_top))
    for i in range(B - 1):
        halo_runs.append((i * Hp + pad_top + H, KH - 1))
    if KH - 1 - pad_top > 0:
        halo_runs.append(((B - 1) * Hp + pad_top + H, KH - 1 - pad_top))
    for ref in (xpad_ref, hpad_ref):
        for start, length in halo_runs:
            ref[start:start + length, :] = jnp.zeros(
                (length, ref.shape[1]), ref.dtype)

    # Stack the B images (each with its own zero halo rows) into one tall row
    # band so every conv below is a single fat matmul with M = Q ~= B*H rows.
    for i in range(B):
        xpad_ref[i * Hp + pad_top:i * Hp + pad_top + H, :] = (
            x_ref[i].astype(cdtype))

    def conv_rows(pad_ref, m_ref):
        # 'same' conv of the whole stack as KH fat matmuls (block-Toeplitz).
        acc = jnp.dot(pad_ref[0:Q, :], m_ref[0],
                      preferred_element_type=jnp.float32)
        for ky in range(1, KH):
            acc = acc + jnp.dot(pad_ref[ky:ky + Q, :], m_ref[ky],
                                preferred_element_type=jnp.float32)
        return acc

    # conv1 (+ folded bn0 affine) + LeakyReLU.
    h = conv_rows(xpad_ref, m1_ref) + b1_ref[...]
    h = jnp.where(h >= 0, h, alpha * h)
    for i in range(B):                           # keep inter-image halos zero
        hpad_ref[i * Hp + pad_top:i * Hp + pad_top + H, :] = (
            h[i * Hp:i * Hp + H, :].astype(cdtype))

    # conv2 (+ folded bn1 affine) and skip conv; the 2x2 column/channel pool
    # is pre-folded into their weights, so their output width is Wo*Cout.
    t = (conv_rows(hpad_ref, m2_ref) + conv_rows(xpad_ref, m3_ref)
         + b23_ref[...])

    # Row pool: one small matmul that also selects the per-image interiors
    # (and drops the garbage rows between images in the stack).
    pooled = jnp.dot(ph_ref[...], t, preferred_element_type=jnp.float32)
    o_ref[0] = pooled.astype(o_ref.dtype)


# ---------------------------------------------------------------------------
# Weight-side preprocessing (one-time, pure JAX)
# ---------------------------------------------------------------------------
def _toeplitz_conv_matrix(w_hwio, W):
    """(KH,KW,Cin,Cout) HWIO -> (KH, W*Cin, W*Cout) block-Toeplitz matrices M
    so that x_row @ M[ky] is the ky-th row-tap contribution of a zero-padded
    'same' conv for one flattened image row."""
    KH, KW, Cin, Cout = w_hwio.shape
    pad_left = (KW - 1) // 2
    wi = jnp.arange(W)[:, None]
    wo = jnp.arange(W)[None, :]
    kx = jnp.arange(KW)[:, None, None]
    sel = ((wi - wo)[None, :, :] == (kx - pad_left)).astype(w_hwio.dtype)
    m = jnp.einsum("kab,hkio->haibo", sel, w_hwio)     # (KH, W, Cin, W, Cout)
    return m.reshape(KH, W * Cin, W * Cout)


def _col_pool_matrix(W, Cout, sw, dtype):
    """(W*Cout, Wo*Cout) column/channel average-pool matrix (floor mode)."""
    Wo = W // sw
    colsel = (jnp.arange(W)[:, None] // sw ==
              jnp.arange(Wo)[None, :]).astype(dtype)
    return jnp.kron(colsel, jnp.eye(Cout, dtype=dtype)) / sw


def _row_pool_matrix(B, H, KH, sh, dtype):
    """(B*Ho, Q) row average-pool matrix over the stacked conv-output rows."""
    Hp = H + KH - 1
    Q = B * Hp - (KH - 1)
    Ho = H // sh
    rows = jnp.arange(B * Ho)
    start = (rows // Ho) * Hp + (rows % Ho) * sh
    q = jnp.arange(Q)[None, :]
    sel = (q >= start[:, None]) & (q < start[:, None] + sh)
    return sel.astype(dtype) / sh


def _spectral_normalize(w_hwio, u0, n_iters=1, eps=1e-12):
    """Spectral-norm weight scaling (inference: fixed u, n_iters power its)."""
    cout = w_hwio.shape[-1]
    wmat = jnp.transpose(w_hwio, (3, 2, 0, 1)).reshape(cout, -1)
    u = u0 / (jnp.linalg.norm(u0) + eps)
    v = wmat.T @ u
    for _ in range(max(n_iters, 1)):
        v = wmat.T @ u
        v = v / (jnp.linalg.norm(v) + eps)
        u = wmat @ v
        u = u / (jnp.linalg.norm(u) + eps)
    sigma = jnp.dot(u, wmat @ v)
    return w_hwio / sigma


def _bn_affine(bn, eps=1e-5):
    """Inference-mode BatchNorm as a per-channel affine (scale, shift)."""
    scale = bn["gamma"] * lax.rsqrt(bn["var"] + eps)
    shift = bn["beta"] - bn["mean"] * scale
    return scale, shift


def snconv_effective_weights(params, *, sn_iters=1):
    """Spectral-norm scaling shared by the Pallas path and the reference."""
    return {
        "w_conv":  _spectral_normalize(params["w_conv"], params["u_conv"], sn_iters),
        "w_down":  _spectral_normalize(params["w_down"], params["u_down"], sn_iters),
        "w_down0": _spectral_normalize(params["w_down0"], params["u_down0"], sn_iters),
        "b_conv": params["b_conv"], "b_down": params["b_down"],
        "b_down0": params["b_down0"],
        "bn0": params["bn0"], "bn1": params["bn1"],
    }


# ---------------------------------------------------------------------------
# Block forward: single fused pallas_call (NHWC core, no layout transposes)
# ---------------------------------------------------------------------------
def sn_norm_block_forward_nhwc(x_nhwc, eff, *, stride=(2, 2), alpha=0.2,
                               bn_eps=1e-5, compute_dtype=jnp.bfloat16,
                               images_per_step=None):
    N, H, W, Cin = x_nhwc.shape
    KH, KW, _, Cout = eff["w_conv"].shape
    assert KH % 2 == 1 and KW % 2 == 1, "odd kernels only ('same' padding)"
    sh, sw = stride
    assert (sh > 1 or sw > 1) or Cin != Cout, \
        "identity-skip path (stride==1 and Cin==Cout) not implemented"
    Ho, Wo = H // sh, W // sw
    f32, cdt = jnp.float32, compute_dtype

    # Inference-mode BatchNorm folded into the conv weights/biases.  bn1 is a
    # per-channel affine and commutes with the average pool, so it folds into
    # the conv2 (down_conv) weights even though it is applied post-pool.
    g0, c0 = _bn_affine(eff["bn0"], bn_eps)
    g1, c1 = _bn_affine(eff["bn1"], bn_eps)
    w1 = eff["w_conv"].astype(f32) * g0
    b1 = eff["b_conv"].astype(f32) * g0 + c0
    w2 = eff["w_down"].astype(f32) * g1
    b2 = eff["b_down"].astype(f32) * g1 + c1
    w3 = eff["w_down0"].astype(f32)
    b3 = eff["b_down0"].astype(f32)

    # Block-Toeplitz conv matrices; column/channel pool folded into conv2/skip
    # (halves their N dimension and removes one in-kernel matmul).
    pw = _col_pool_matrix(W, Cout, sw, f32)                  # (W*Cout, Wo*Cout)
    m1 = _toeplitz_conv_matrix(w1, W).astype(cdt)            # (KH, W*Cin , W*Cout)
    m2 = (_toeplitz_conv_matrix(w2, W) @ pw).astype(cdt)     # (KH, W*Cout, Wo*Cout)
    m3 = (_toeplitz_conv_matrix(w3, W) @ pw).astype(cdt)     # (KH, W*Cin , Wo*Cout)
    b1r = jnp.tile(b1, W).reshape(1, W * Cout)               # f32 bias rows
    b23 = jnp.tile(b2 + b3, W).reshape(1, W * Cout) @ pw     # (1, Wo*Cout)

    # Images per grid step: stack B images so the MXU M dimension is ~B*H and
    # per-grid-step overhead is amortised.
    if images_per_step is None:
        divs = [b for b in range(1, N + 1) if N % b == 0 and b * H <= 512]
        B = divs[-1] if divs else 1
        pref = [b for b in divs if N // b >= 2 and b * H >= 128]
        if pref:                       # keep >=2 steps for the two v7x cores
            B = pref[-1]
    else:
        B = images_per_step
    assert N % B == 0, (N, B)
    steps = N // B
    Hp = H + KH - 1
    Q = B * Hp - (KH - 1)
    ph = _row_pool_matrix(B, H, KH, sh, f32)                 # (B*Ho, Q)

    x_rows = x_nhwc.reshape(N, H, W * Cin)                   # lane-dense rows

    kernel = functools.partial(_fused_block_kernel, B=B, H=H, KH=KH,
                               alpha=alpha, cdtype=cdt)

    in_specs = [
        pl.BlockSpec((B, H, W * Cin), lambda n: (n, 0, 0)),
        pl.BlockSpec((KH, W * Cin, W * Cout), lambda n: (0, 0, 0)),
        pl.BlockSpec((1, W * Cout), lambda n: (0, 0)),
        pl.BlockSpec((KH, W * Cout, Wo * Cout), lambda n: (0, 0, 0)),
        pl.BlockSpec((KH, W * Cin, Wo * Cout), lambda n: (0, 0, 0)),
        pl.BlockSpec((1, Wo * Cout), lambda n: (0, 0)),
        pl.BlockSpec((B * Ho, Q), lambda n: (0, 0)),
    ]
    # NOTE: at this toy shape Wo*Cout = 64 (== full array dim); for realistic
    # channel counts keep Wo*Cout a multiple of 128 so the store is lane-dense.
    out_spec = pl.BlockSpec((1, B * Ho, Wo * Cout), lambda n: (n, 0, 0))
    scratch = [pltpu.VMEM((B * Hp, W * Cin), cdt),    # stacked padded x rows
               pltpu.VMEM((B * Hp, W * Cout), cdt)]   # stacked padded h rows

    # Tight, shape-derived VMEM budget (inputs/outputs double-buffered by the
    # pipeliner), with 4x headroom; never exceeds v7x's 32 MiB scoped default.
    def _nbytes(shape, dtype):
        return math.prod(shape) * jnp.dtype(dtype).itemsize
    block_bytes = (
        _nbytes((B, H, W * Cin), x_rows.dtype)
        + _nbytes((KH, W * Cin, W * Cout), cdt)
        + _nbytes((1, W * Cout), f32)
        + _nbytes((KH, W * Cout, Wo * Cout), cdt)
        + _nbytes((KH, W * Cin, Wo * Cout), cdt)
        + _nbytes((1, Wo * Cout), f32)
        + _nbytes((B * Ho, Q), f32)
        + _nbytes((1, B * Ho, Wo * Cout), x_nhwc.dtype))
    scratch_bytes = (_nbytes((B * Hp, W * Cin), cdt)
                     + _nbytes((B * Hp, W * Cout), cdt))
    vmem_limit = int(min(32 * 1024 * 1024,
                         max(4 * 1024 * 1024,
                             4 * (2 * block_bytes + scratch_bytes))))

    out_rows = pl.pallas_call(
        kernel,
        out_shape=jax.ShapeDtypeStruct((steps, B * Ho, Wo * Cout), x_nhwc.dtype),
        grid=(steps,),
        in_specs=in_specs,
        out_specs=out_spec,
        scratch_shapes=scratch,
        compiler_params=pltpu.CompilerParams(
            dimension_semantics=("parallel",),
            vmem_limit_bytes=vmem_limit),
    )(x_rows, m1, b1r, m2, m3, b23, ph)

    # (steps, B*Ho, Wo*Cout) -> (N, Ho, Wo, Cout): pure reshape, no transpose.
    return out_rows.reshape(N, Ho, Wo, Cout)


def sn_norm_block_forward_nchw(x_nchw, eff, **kwargs):
    """Drop-in NCHW adapter (PyTorch layout).  Prefer the NHWC entry point to
    avoid these two full-activation transposes."""
    y = sn_norm_block_forward_nhwc(jnp.transpose(x_nchw, (0, 2, 3, 1)), eff,
                                   **kwargs)
    return jnp.transpose(y, (0, 3, 1, 2))


# ---------------------------------------------------------------------------
# Pure-JAX reference (conv/pool via XLA, explicit BN affines) for self-check
# ---------------------------------------------------------------------------
def _conv_same_nhwc(x, w, b):
    y = lax.conv_general_dilated(x, w, (1, 1), "SAME",
                                 dimension_numbers=("NHWC", "HWIO", "NHWC"))
    return y + b.reshape(1, 1, 1, -1)


def _avg_pool_nhwc(t, sh, sw):
    N, H, W, C = t.shape
    Ho, Wo = H // sh, W // sw
    t = t[:, :Ho * sh, :Wo * sw, :]
    return t.reshape(N, Ho, sh, Wo, sw, C).mean(axis=(2, 4))


def sn_norm_block_reference_nhwc(x, eff, *, stride=(2, 2), alpha=0.2,
                                 bn_eps=1e-5):
    g0, c0 = _bn_affine(eff["bn0"], bn_eps)
    g1, c1 = _bn_affine(eff["bn1"], bn_eps)
    h = _conv_same_nhwc(x, eff["w_conv"], eff["b_conv"])
    h = h * g0 + c0                               # bn0 (inference)
    h = jnp.where(h >= 0, h, alpha * h)           # LeakyReLU
    h = _conv_same_nhwc(h, eff["w_down"], eff["b_down"])
    h = _avg_pool_nhwc(h, *stride)
    h = h * g1 + c1                               # bn1 (inference, post-pool)
    s = _conv_same_nhwc(x, eff["w_down0"], eff["b_down0"])
    s = _avg_pool_nhwc(s, *stride)
    return h + s


# ---------------------------------------------------------------------------
# Deterministic parameter init (mirrors the module's shapes/initialisers)
# ---------------------------------------------------------------------------
def _xavier_uniform_hwio(key, kh, kw, cin, cout):
    fan_in, fan_out = cin * kh * kw, cout * kh * kw
    bound = math.sqrt(6.0 / (fan_in + fan_out))
    return jax.random.uniform(key, (kh, kw, cin, cout), jnp.float32,
                              -bound, bound)


def _conv_bias(key, kh, kw, cin, cout):
    bound = 1.0 / math.sqrt(cin * kh * kw)
    return jax.random.uniform(key, (cout,), jnp.float32, -bound, bound)


def _bn_state(key, c):
    k1, k2, k3, k4 = jax.random.split(key, 4)
    return {"gamma": jax.random.uniform(k1, (c,), jnp.float32, 0.5, 1.5),
            "beta":  0.1 * jax.random.normal(k2, (c,), jnp.float32),
            "mean":  0.1 * jax.random.normal(k3, (c,), jnp.float32),
            "var":   jax.random.uniform(k4, (c,), jnp.float32, 0.5, 1.5)}


def init_sn_norm_block_params(key, cin, cout, kernel=(3, 3)):
    kh, kw = kernel
    ks = jax.random.split(key, 11)
    return {
        "w_conv":  _xavier_uniform_hwio(ks[0], kh, kw, cin, cout),
        "b_conv":  _conv_bias(ks[1], kh, kw, cin, cout),
        "u_conv":  jax.random.normal(ks[2], (cout,), jnp.float32),
        "w_down":  _xavier_uniform_hwio(ks[3], kh, kw, cout, cout),
        "b_down":  _conv_bias(ks[4], kh, kw, cout, cout),
        "u_down":  jax.random.normal(ks[5], (cout,), jnp.float32),
        "w_down0": _xavier_uniform_hwio(ks[6], kh, kw, cin, cout),
        "b_down0": _conv_bias(ks[7], kh, kw, cin, cout),
        "u_down0": jax.random.normal(ks[8], (cout,), jnp.float32),
        "bn0": _bn_state(ks[9], cout),
        "bn1": _bn_state(ks[10], cout),
    }


if __name__ == "__main__":
    key = jax.random.PRNGKey(0)
    k_x, k_p = jax.random.split(key)

    N, Cin, H, W, Cout = 2, 4, 16, 16, 8
    x_nchw = jax.random.normal(k_x, (N, Cin, H, W), jnp.float32)
    params = init_sn_norm_block_params(k_p, Cin, Cout, kernel=(3, 3))

    # Spectral-norm weight scaling (sn_iters=1), shared by kernel + reference.
    eff = snconv_effective_weights(params, sn_iters=1)

    # Kernel path is NHWC end-to-end; this transpose is test-harness only
    # (an NHWC model feeds the kernel directly, no layout round trip).
    x = jnp.transpose(x_nchw, (0, 2, 3, 1))

    ref = jax.block_until_ready(
        sn_norm_block_reference_nhwc(x, eff, stride=(2, 2), alpha=0.2))

    # f32 compute mode: tight check of the fused-kernel math (Toeplitz conv,
    # halo padding, BN/SN/pool folds, row pool).
    out_f32 = jax.block_until_ready(
        sn_norm_block_forward_nhwc(x, eff, stride=(2, 2), alpha=0.2,
                                   compute_dtype=jnp.float32))
    assert out_f32.shape == (N, H // 2, W // 2, Cout), out_f32.shape
    assert jnp.allclose(out_f32, ref, atol=1e-4, rtol=1e-4), \
        float(jnp.max(jnp.abs(out_f32 - ref)))

    # bf16 compute mode (default; MXU-native on v6e/v7x): tolerance loosened
    # for bf16 operand quantisation (~1% expected), per review guidance.
    out_bf16 = jax.block_until_ready(
        sn_norm_block_forward_nhwc(x, eff, stride=(2, 2), alpha=0.2))
    rel = float(jnp.max(jnp.abs(out_bf16 - ref))
                / (jnp.max(jnp.abs(ref)) + 1e-6))
    assert rel < 0.08, rel

    print("KERNEL_OK")
</pallas_src>

<mosaic_0001>
module attributes {stable_mosaic.version = 11 : i64} {
  func.func @_fused_block_kernel(%arg0: i32, %arg1: memref<2x16x64xf32, #tpu.memory_space<vmem>>, %arg2: memref<3x64x128xf32, #tpu.memory_space<vmem>>, %arg3: memref<1x128xf32, #tpu.memory_space<vmem>>, %arg4: memref<3x128x64xf32, #tpu.memory_space<vmem>>, %arg5: memref<3x64x64xf32, #tpu.memory_space<vmem>>, %arg6: memref<1x64xf32, #tpu.memory_space<vmem>>, %arg7: memref<16x34xf32, #tpu.memory_space<vmem>>, %arg8: memref<1x16x64xf32, #tpu.memory_space<vmem>>, %arg9: memref<36x64xf32, #tpu.memory_space<vmem>>, %arg10: memref<36x128xf32, #tpu.memory_space<vmem>>) attributes {dimension_semantics = [#tpu.dimension_semantics<parallel>], iteration_bounds = array<i64: 1>, scalar_prefetch = 0 : i64, scratch_operands = 2 : i64, tpu.core_type = #tpu.core_type<tc>, window_params = [{transform_indices = @transform_0, window_bounds = array<i64: 2, 16, 64>}, {pipeline_mode = #tpu.pipeline_mode<synchronous>, transform_indices = @transform_1, window_bounds = array<i64: 3, 64, 128>}, {pipeline_mode = #tpu.pipeline_mode<synchronous>, transform_indices = @transform_2, window_bounds = array<i64: 1, 128>}, {pipeline_mode = #tpu.pipeline_mode<synchronous>, transform_indices = @transform_3, window_bounds = array<i64: 3, 128, 64>}, {pipeline_mode = #tpu.pipeline_mode<synchronous>, transform_indices = @transform_4, window_bounds = array<i64: 3, 64, 64>}, {pipeline_mode = #tpu.pipeline_mode<synchronous>, transform_indices = @transform_5, window_bounds = array<i64: 1, 64>}, {pipeline_mode = #tpu.pipeline_mode<synchronous>, transform_indices = @transform_6, window_bounds = array<i64: 16, 34>}, {transform_indices = @transform_7, window_bounds = array<i64: 1, 16, 64>}]} {
    %cst = arith.constant 0.000000e+00 : f32
    %0 = vector.broadcast %cst : f32 to vector<1x64xf32>
    %c0 = arith.constant 0 : index
    %c0_0 = arith.constant 0 : index
    %1 = vector.load %arg9[%c0, %c0_0] : memref<36x64xf32, #tpu.memory_space<vmem>>, vector<1x64xf32>
    tpu.vector_store %arg9[%c0, %c0_0], %0 {strides = array<i32>} : memref<36x64xf32, #tpu.memory_space<vmem>>, vector<1x64xf32>,
    %cst_1 = arith.constant 0.000000e+00 : f32
    %2 = vector.broadcast %cst_1 : f32 to vector<2x64xf32>
    %c17 = arith.constant 17 : index
    %c0_2 = arith.constant 0 : index
    %3 = vector.load %arg9[%c17, %c0_2] : memref<36x64xf32, #tpu.memory_space<vmem>>, vector<2x64xf32>
    tpu.vector_store %arg9[%c17, %c0_2], %2 {strides = array<i32>} : memref<36x64xf32, #tpu.memory_space<vmem>>, vector<2x64xf32>,
    %cst_3 = arith.constant 0.000000e+00 : f32
    %4 = vector.broadcast %cst_3 : f32 to vector<1x64xf32>
    %c35 = arith.constant 35 : index
    %c0_4 = arith.constant 0 : index
    %5 = vector.load %arg9[%c35, %c0_4] : memref<36x64xf32, #tpu.memory_space<vmem>>, vector<1x64xf32>
    tpu.vector_store %arg9[%c35, %c0_4], %4 {strides = array<i32>} : memref<36x64xf32, #tpu.memory_space<vmem>>, vector<1x64xf32>,
    %cst_5 = arith.constant 0.000000e+00 : f32
    %6 = vector.broadcast %cst_5 : f32 to vector<1x128xf32>
    %c0_6 = arith.constant 0 : index
    %c0_7 = arith.constant 0 : index
    %7 = vector.load %arg10[%c0_6, %c0_7] : memref<36x128xf32, #tpu.memory_space<vmem>>, vector<1x128xf32>
    tpu.vector_store %arg10[%c0_6, %c0_7], %6 {strides = array<i32>} : memref<36x128xf32, #tpu.memory_space<vmem>>, vector<1x128xf32>,
    %cst_8 = arith.constant 0.000000e+00 : f32
    %8 = vector.broadcast %cst_8 : f32 to vector<2x128xf32>
    %c17_9 = arith.constant 17 : index
    %c0_10 = arith.constant 0 : index
    %9 = vector.load %arg10[%c17_9, %c0_10] : memref<36x128xf32, #tpu.memory_space<vmem>>, vector<2x128xf32>
    tpu.vector_store %arg10[%c17_9, %c0_10], %8 {strides = array<i32>} : memref<36x128xf32, #tpu.memory_space<vmem>>, vector<2x128xf32>,
    %cst_11 = arith.constant 0.000000e+00 : f32
    %10 = vector.broadcast %cst_11 : f32 to vector<1x128xf32>
    %c35_12 = arith.constant 35 : index
    %c0_13 = arith.constant 0 : index
    %11 = vector.load %arg10[%c35_12, %c0_13] : memref<36x128xf32, #tpu.memory_space<vmem>>, vector<1x128xf32>
    tpu.vector_store %arg10[%c35_12, %c0_13], %10 {strides = array<i32>} : memref<36x128xf32, #tpu.memory_space<vmem>>, vector<1x128xf32>,
    %c0_14 = arith.constant 0 : index
    %c0_15 = arith.constant 0 : index
    %c0_16 = arith.constant 0 : index
    %12 = vector.load %arg1[%c0_14, %c0_15, %c0_16] : memref<2x16x64xf32, #tpu.memory_space<vmem>>, vector<1x16x64xf32>
    %13 = vector.shape_cast %12 : vector<1x16x64xf32> to vector<16x64xf32>
    %c1 = arith.constant 1 : index
    %c0_17 = arith.constant 0 : index
    %14 = vector.load %arg9[%c1, %c0_17] : memref<36x64xf32, #tpu.memory_space<vmem>>, vector<16x64xf32>
    tpu.vector_store %arg9[%c1, %c0_17], %13 {strides = array<i32>} : memref<36x64xf32, #tpu.memory_space<vmem>>, vector<16x64xf32>,
    %c1_18 = arith.constant 1 : index
    %c0_19 = arith.constant 0 : index
    %c0_20 = arith.constant 0 : index
    %15 = vector.load %arg1[%c1_18, %c0_19, %c0_20] : memref<2x16x64xf32, #tpu.memory_space<vmem>>, vector<1x16x64xf32>
    %16 = vector.shape_cast %15 : vector<1x16x64xf32> to vector<16x64xf32>
    %c19 = arith.constant 19 : index
    %c0_21 = arith.constant 0 : index
    %17 = vector.load %arg9[%c19, %c0_21] : memref<36x64xf32, #tpu.memory_space<vmem>>, vector<16x64xf32>
    tpu.vector_store %arg9[%c19, %c0_21], %16 {strides = array<i32>} : memref<36x64xf32, #tpu.memory_space<vmem>>, vector<16x64xf32>,
    %c0_22 = arith.constant 0 : index
    %c0_23 = arith.constant 0 : index
    %18 = vector.load %arg9[%c0_22, %c0_23] : memref<36x64xf32, #tpu.memory_space<vmem>>, vector<34x64xf32>
    %c0_24 = arith.constant 0 : index
    %c0_25 = arith.constant 0 : index
    %c0_26 = arith.constant 0 : index
    %19 = vector.load %arg2[%c0_24, %c0_25, %c0_26] : memref<3x64x128xf32, #tpu.memory_space<vmem>>, vector<1x64x128xf32>
    %20 = vector.shape_cast %19 : vector<1x64x128xf32> to vector<64x128xf32>
    %cst_27 = arith.constant dense<0.000000e+00> : vector<34x128xf32>
    %21 = tpu.matmul %18, %20, %cst_27 {dimension_numbers = #tpu.dot_dimension_numbers<[1], [0], [0], [1], [0, 0, 1, 1], [], []>} : vector<34x64xf32>, vector<64x128xf32>, vector<34x128xf32> -> vector<34x128xf32>
    %c1_28 = arith.constant 1 : index
    %c0_29 = arith.constant 0 : index
    %22 = vector.load %arg9[%c1_28, %c0_29] : memref<36x64xf32, #tpu.memory_space<vmem>>, vector<34x64xf32>
    %c1_30 = arith.constant 1 : index
    %c0_31 = arith.constant 0 : index
    %c0_32 = arith.constant 0 : index
    %23 = vector.load %arg2[%c1_30, %c0_31, %c0_32] : memref<3x64x128xf32, #tpu.memory_space<vmem>>, vector<1x64x128xf32>
    %24 = vector.shape_cast %23 : vector<1x64x128xf32> to vector<64x128xf32>
    %cst_33 = arith.constant dense<0.000000e+00> : vector<34x128xf32>
    %25 = tpu.matmul %22, %24, %cst_33 {dimension_numbers = #tpu.dot_dimension_numbers<[1], [0], [0], [1], [0, 0, 1, 1], [], []>} : vector<34x64xf32>, vector<64x128xf32>, vector<34x128xf32> -> vector<34x128xf32>
    %26 = arith.addf %21, %25 : vector<34x128xf32>
    %c2 = arith.constant 2 : index
    %c0_34 = arith.constant 0 : index
    %27 = vector.load %arg9[%c2, %c0_34] : memref<36x64xf32, #tpu.memory_space<vmem>>, vector<34x64xf32>
    %c2_35 = arith.constant 2 : index
    %c0_36 = arith.constant 0 : index
    %c0_37 = arith.constant 0 : index
    %28 = vector.load %arg2[%c2_35, %c0_36, %c0_37] : memref<3x64x128xf32, #tpu.memory_space<vmem>>, vector<1x64x128xf32>
    %29 = vector.shape_cast %28 : vector<1x64x128xf32> to vector<64x128xf32>
    %cst_38 = arith.constant dense<0.000000e+00> : vector<34x128xf32>
    %30 = tpu.matmul %27, %29, %cst_38 {dimension_numbers = #tpu.dot_dimension_numbers<[1], [0], [0], [1], [0, 0, 1, 1], [], []>} : vector<34x64xf32>, vector<64x128xf32>, vector<34x128xf32> -> vector<34x128xf32>
    %31 = arith.addf %26, %30 : vector<34x128xf32>
    %c0_39 = arith.constant 0 : index
    %c0_40 = arith.constant 0 : index
    %32 = vector.load %arg3[%c0_39, %c0_40] : memref<1x128xf32, #tpu.memory_space<vmem>>, vector<1x128xf32>
    %33 = vector.broadcast %32 : vector<1x128xf32> to vector<34x128xf32>
    %34 = arith.addf %31, %33 : vector<34x128xf32>
    %cst_41 = arith.constant 0.000000e+00 : f32
    %35 = vector.broadcast %cst_41 : f32 to vector<34x128xf32>
    %36 = arith.cmpf oge, %34, %35 : vector<34x128xf32>
    %cst_42 = arith.constant 2.000000e-01 : f32
    %37 = vector.broadcast %cst_42 : f32 to vector<34x128xf32>
    %38 = arith.mulf %37, %34 : vector<34x128xf32>
    %39 = arith.select %36, %34, %38 : vector<34x128xi1>, vector<34x128xf32>
    %40 = vector.extract_strided_slice %39 {offsets = [0, 0], sizes = [16, 128], strides = [1, 1]} : vector<34x128xf32> to vector<16x128xf32>
    %c1_43 = arith.constant 1 : index
    %c0_44 = arith.constant 0 : index
    %41 = vector.load %arg10[%c1_43, %c0_44] : memref<36x128xf32, #tpu.memory_space<vmem>>, vector<16x128xf32>
    tpu.vector_store %arg10[%c1_43, %c0_44], %40 {strides = array<i32>} : memref<36x128xf32, #tpu.memory_space<vmem>>, vector<16x128xf32>,
    %42 = vector.extract_strided_slice %39 {offsets = [18, 0], sizes = [16, 128], strides = [1, 1]} : vector<34x128xf32> to vector<16x128xf32>
    %c19_45 = arith.constant 19 : index
    %c0_46 = arith.constant 0 : index
    %43 = vector.load %arg10[%c19_45, %c0_46] : memref<36x128xf32, #tpu.memory_space<vmem>>, vector<16x128xf32>
    tpu.vector_store %arg10[%c19_45, %c0_46], %42 {strides = array<i32>} : memref<36x128xf32, #tpu.memory_space<vmem>>, vector<16x128xf32>,
    %c0_47 = arith.constant 0 : index
    %c0_48 = arith.constant 0 : index
    %44 = vector.load %arg10[%c0_47, %c0_48] : memref<36x128xf32, #tpu.memory_space<vmem>>, vector<34x128xf32>
    %c0_49 = arith.constant 0 : index
    %c0_50 = arith.constant 0 : index
    %c0_51 = arith.constant 0 : index
    %45 = vector.load %arg4[%c0_49, %c0_50, %c0_51] : memref<3x128x64xf32, #tpu.memory_space<vmem>>, vector<1x128x64xf32>
    %46 = vector.shape_cast %45 : vector<1x128x64xf32> to vector<128x64xf32>
    %cst_52 = arith.constant dense<0.000000e+00> : vector<34x64xf32>
    %47 = tpu.matmul %44, %46, %cst_52 {dimension_numbers = #tpu.dot_dimension_numbers<[1], [0], [0], [1], [0, 0, 1, 1], [], []>} : vector<34x128xf32>, vector<128x64xf32>, vector<34x64xf32> -> vector<34x64xf32>
    %c1_53 = arith.constant 1 : index
    %c0_54 = arith.constant 0 : index
    %48 = vector.load %arg10[%c1_53, %c0_54] : memref<36x128xf32, #tpu.memory_space<vmem>>, vector<34x128xf32>
    %c1_55 = arith.constant 1 : index
    %c0_56 = arith.constant 0 : index
    %c0_57 = arith.constant 0 : index
    %49 = vector.load %arg4[%c1_55, %c0_56, %c0_57] : memref<3x128x64xf32, #tpu.memory_space<vmem>>, vector<1x128x64xf32>
    %50 = vector.shape_cast %49 : vector<1x128x64xf32> to vector<128x64xf32>
    %cst_58 = arith.constant dense<0.000000e+00> : vector<34x64xf32>
    %51 = tpu.matmul %48, %50, %cst_58 {dimension_numbers = #tpu.dot_dimension_numbers<[1], [0], [0], [1], [0, 0, 1, 1], [], []>} : vector<34x128xf32>, vector<128x64xf32>, vector<34x64xf32> -> vector<34x64xf32>
    %52 = arith.addf %47, %51 : vector<34x64xf32>
    %c2_59 = arith.constant 2 : index
    %c0_60 = arith.constant 0 : index
    %53 = vector.load %arg10[%c2_59, %c0_60] : memref<36x128xf32, #tpu.memory_space<vmem>>, vector<34x128xf32>
    %c2_61 = arith.constant 2 : index
    %c0_62 = arith.constant 0 : index
    %c0_63 = arith.constant 0 : index
    %54 = vector.load %arg4[%c2_61, %c0_62, %c0_63] : memref<3x128x64xf32, #tpu.memory_space<vmem>>, vector<1x128x64xf32>
    %55 = vector.shape_cast %54 : vector<1x128x64xf32> to vector<128x64xf32>
    %cst_64 = arith.constant dense<0.000000e+00> : vector<34x64xf32>
    %56 = tpu.matmul %53, %55, %cst_64 {dimension_numbers = #tpu.dot_dimension_numbers<[1], [0], [0], [1], [0, 0, 1, 1], [], []>} : vector<34x128xf32>, vector<128x64xf32>, vector<34x64xf32> -> vector<34x64xf32>
    %57 = arith.addf %52, %56 : vector<34x64xf32>
    %c0_65 = arith.constant 0 : index
    %c0_66 = arith.constant 0 : index
    %58 = vector.load %arg9[%c0_65, %c0_66] : memref<36x64xf32, #tpu.memory_space<vmem>>, vector<34x64xf32>
    %c0_67 = arith.constant 0 : index
    %c0_68 = arith.constant 0 : index
    %c0_69 = arith.constant 0 : index
    %59 = vector.load %arg5[%c0_67, %c0_68, %c0_69] : memref<3x64x64xf32, #tpu.memory_space<vmem>>, vector<1x64x64xf32>
    %60 = vector.shape_cast %59 : vector<1x64x64xf32> to vector<64x64xf32>
    %cst_70 = arith.constant dense<0.000000e+00> : vector<34x64xf32>
    %61 = tpu.matmul %58, %60, %cst_70 {dimension_numbers = #tpu.dot_dimension_numbers<[1], [0], [0], [1], [0, 0, 1, 1], [], []>} : vector<34x64xf32>, vector<64x64xf32>, vector<34x64xf32> -> vector<34x64xf32>
    %c1_71 = arith.constant 1 : index
    %c0_72 = arith.constant 0 : index
    %62 = vector.load %arg9[%c1_71, %c0_72] : memref<36x64xf32, #tpu.memory_space<vmem>>, vector<34x64xf32>
    %c1_73 = arith.constant 1 : index
    %c0_74 = arith.constant 0 : index
    %c0_75 = arith.constant 0 : index
    %63 = vector.load %arg5[%c1_73, %c0_74, %c0_75] : memref<3x64x64xf32, #tpu.memory_space<vmem>>, vector<1x64x64xf32>
    %64 = vector.shape_cast %63 : vector<1x64x64xf32> to vector<64x64xf32>
    %cst_76 = arith.constant dense<0.000000e+00> : vector<34x64xf32>
    %65 = tpu.matmul %62, %64, %cst_76 {dimension_numbers = #tpu.dot_dimension_numbers<[1], [0], [0], [1], [0, 0, 1, 1], [], []>} : vector<34x64xf32>, vector<64x64xf32>, vector<34x64xf32> -> vector<34x64xf32>
    %66 = arith.addf %61, %65 : vector<34x64xf32>
    %c2_77 = arith.constant 2 : index
    %c0_78 = arith.constant 0 : index
    %67 = vector.load %arg9[%c2_77, %c0_78] : memref<36x64xf32, #tpu.memory_space<vmem>>, vector<34x64xf32>
    %c2_79 = arith.constant 2 : index
    %c0_80 = arith.constant 0 : index
    %c0_81 = arith.constant 0 : index
    %68 = vector.load %arg5[%c2_79, %c0_80, %c0_81] : memref<3x64x64xf32, #tpu.memory_space<vmem>>, vector<1x64x64xf32>
    %69 = vector.shape_cast %68 : vector<1x64x64xf32> to vector<64x64xf32>
    %cst_82 = arith.constant dense<0.000000e+00> : vector<34x64xf32>
    %70 = tpu.matmul %67, %69, %cst_82 {dimension_numbers = #tpu.dot_dimension_numbers<[1], [0], [0], [1], [0, 0, 1, 1], [], []>} : vector<34x64xf32>, vector<64x64xf32>, vector<34x64xf32> -> vector<34x64xf32>
    %71 = arith.addf %66, %70 : vector<34x64xf32>
    %72 = arith.addf %57, %71 : vector<34x64xf32>
    %c0_83 = arith.constant 0 : index
    %c0_84 = arith.constant 0 : index
    %73 = vector.load %arg6[%c0_83, %c0_84] : memref<1x64xf32, #tpu.memory_space<vmem>>, vector<1x64xf32>
    %74 = vector.broadcast %73 : vector<1x64xf32> to vector<34x64xf32>
    %75 = arith.addf %72, %74 : vector<34x64xf32>
    %c0_85 = arith.constant 0 : index
    %c0_86 = arith.constant 0 : index
    %76 = vector.load %arg7[%c0_85, %c0_86] : memref<16x34xf32, #tpu.memory_space<vmem>>, vector<16x34xf32>
    %cst_87 = arith.constant dense<0.000000e+00> : vector<16x64xf32>
    %77 = tpu.matmul %76, %75, %cst_87 {dimension_numbers = #tpu.dot_dimension_numbers<[1], [0], [0], [1], [0, 0, 1, 1], [], []>} : vector<16x34xf32>, vector<34x64xf32>, vector<16x64xf32> -> vector<16x64xf32>
    %c0_88 = arith.constant 0 : index
    %c0_89 = arith.constant 0 : index
    %c0_90 = arith.constant 0 : index
    %78 = vector.load %arg8[%c0_88, %c0_89, %c0_90] : memref<1x16x64xf32, #tpu.memory_space<vmem>>, vector<1x16x64xf32>
    %79 = vector.shape_cast %78 : vector<1x16x64xf32> to vector<16x64xf32>
    %80 = vector.shape_cast %77 : vector<16x64xf32> to vector<1x16x64xf32>
    tpu.vector_store %arg8[%c0_88, %c0_89, %c0_90], %80 {strides = array<i32>} : memref<1x16x64xf32, #tpu.memory_space<vmem>>, vector<1x16x64xf32>,
    return
  }
  func.func @transform_0(%arg0: i32) -> (i32, i32, i32) {
    %c0_i32 = arith.constant 0 : i32
    %c0_i32_0 = arith.constant 0 : i32
    %c0_i32_1 = arith.constant 0 : i32
    return %arg0, %c0_i32, %c0_i32_0 : i32, i32, i32
  }
  func.func @transform_1(%arg0: i32) -> (i32, i32, i32) {
    %c0_i32 = arith.constant 0 : i32
    %c0_i32_0 = arith.constant 0 : i32
    %c0_i32_1 = arith.constant 0 : i32
    %c0_i32_2 = arith.constant 0 : i32
    return %c0_i32, %c0_i32_0, %c0_i32_1 : i32, i32, i32
  }
  func.func @transform_2(%arg0: i32) -> (i32, i32) {
    %c0_i32 = arith.constant 0 : i32
    %c0_i32_0 = arith.constant 0 : i32
    %c0_i32_1 = arith.constant 0 : i32
    return %c0_i32, %c0_i32_0 : i32, i32
  }
  func.func @transform_3(%arg0: i32) -> (i32, i32, i32) {
    %c0_i32 = arith.constant 0 : i32
    %c0_i32_0 = arith.constant 0 : i32
    %c0_i32_1 = arith.constant 0 : i32
    %c0_i32_2 = arith.constant 0 : i32
    return %c0_i32, %c0_i32_0, %c0_i32_1 : i32, i32, i32
  }
  func.func @transform_4(%arg0: i32) -> (i32, i32, i32) {
    %c0_i32 = arith.constant 0 : i32
    %c0_i32_0 = arith.constant 0 : i32
    %c0_i32_1 = arith.constant 0 : i32
    %c0_i32_2 = arith.constant 0 : i32
    return %c0_i32, %c0_i32_0, %c0_i32_1 : i32, i32, i32
  }
  func.func @transform_5(%arg0: i32) -> (i32, i32) {
    %c0_i32 = arith.constant 0 : i32
    %c0_i32_0 = arith.constant 0 : i32
    %c0_i32_1 = arith.constant 0 : i32
    return %c0_i32, %c0_i32_0 : i32, i32
  }
  func.func @transform_6(%arg0: i32) -> (i32, i32) {
    %c0_i32 = arith.constant 0 : i32
    %c0_i32_0 = arith.constant 0 : i32
    %c0_i32_1 = arith.constant 0 : i32
    return %c0_i32, %c0_i32_0 : i32, i32
  }
  func.func @transform_7(%arg0: i32) -> (i32, i32, i32) {
    %c0_i32 = arith.constant 0 : i32
    %c0_i32_0 = arith.constant 0 : i32
    %c0_i32_1 = arith.constant 0 : i32
    return %arg0, %c0_i32, %c0_i32_0 : i32, i32, i32
  }
}

</mosaic_0001>

<bundles_post_ra>
// kernel: tpu_custom_call.1
= control target key start
LH: loop header
LB: loop body
LE: loop exit
PB: predicated region body
PF: predicated region fallthrough
CT: control target
= control target key end

     0   :  { %vm27_vm0 = vcmask 516096   ;;  %v831_v5 = vmov 0.0   ;;  %vm29_vm1 = vcmask 517120   ;;  %vm37_vm2 = vcmask 523264   ;;  %s1281_s0 = inlined_call_operand.vmem [shape: f32[2,16,64], index: 0, kind: input, shape index: {}]   ;;  %s1282_s1 = inlined_call_operand.vmem [shape: f32[3,64,128], index: 1, kind: input, shape index: {}]   ;;  %s1283_s2 = inlined_call_operand.vmem [shape: f32[1,128], index: 2, kind: input, shape index: {}]   ;;  %s1284_s3 = inlined_call_operand.vmem [shape: f32[3,128,64], index: 3, kind: input, shape index: {}]   ;;  %s1285_s4 = inlined_call_operand.vmem [shape: f32[3,64,64], index: 4, kind: input, shape index: {}]   ;;  %s1286_s5 = inlined_call_operand.vmem [shape: f32[1,64], index: 5, kind: input, shape index: {}]   ;;  %s1287_s6 = inlined_call_operand.vmem [shape: f32[16,34], index: 6, kind: input, shape index: {}]   ;;  %s1288_s7 = inlined_call_operand.hbm [shape: f32[1,16,64], index: 7, kind: output, shape index: {}]  }
   0x1   :  { %v711_v0 = vld [vmem:[%s1282_s1 + $0xb8] sm:$0xff]  ;;  %v710_v1 = vld [vmem:[%s1282_s1 + $0xb0] sm:$0xff]  ;;  %28 = vst.msk [vmem:[#allocation2] sm:$0x1] %vm27_vm0, %v831_v5  ;;  %v709_v6 = vld [vmem:[%s1282_s1 + $0xa8] sm:$0xff] }
   0x2   :  { %v693_v2 = vld [vmem:[%s1282_s1 + $0x78] sm:$0xff]  ;;  %203 = vmatpush.msra.mxu2 %v711_v0  ;;  %v692_v4 = vld [vmem:[%s1282_s1 + $0x70] sm:$0xff]  ;;  %v691_v8 = vld [vmem:[%s1282_s1 + $0x68] sm:$0xff]  ;;  %31 = vst.msk [vmem:[#allocation2 + $0x23] sm:$0x1] %vm27_vm0, %v831_v5 }
   0x3   :  { %95 = vmatpush.msra.mxu0 %v693_v2  ;;  %v57_v3 = vld [vmem:[%s1282_s1 + $0x38] sm:$0xff]  ;;  %v56_v7 = vld [vmem:[%s1282_s1 + $0x30] sm:$0xff]  ;;  %v55_v9 = vld [vmem:[%s1282_s1 + $0x28] sm:$0xff]  ;;  %32 = vst [vmem:[#allocation3] sm:$0x1] %v831_v5 }
   0x4   :  { %142 = vmatpush.msra.mxu1 %v57_v3  ;;  %204 = vmatpush.msra.mxu2 %v710_v1  ;;  %v708_v10 = vld [vmem:[%s1282_s1 + $0xa0] sm:$0xff]  ;;  %33 = vst [vmem:[#allocation3 + $0x11] sm:$0x3] %v831_v5  ;;  %v707_v13 = vld [vmem:[%s1282_s1 + $0x98] sm:$0xff]  ;;  %v706_v16 = vld [vmem:[%s1282_s1 + $0x90] sm:$0xff] }
   0x5   :  { %96 = vmatpush.msra.mxu0 %v692_v4  ;;  %v690_v11 = vld [vmem:[%s1282_s1 + $0x60] sm:$0xff]  ;;  %34 = vst [vmem:[#allocation3 + $0x23] sm:$0x1] %v831_v5  ;;  %v689_v14 = vld [vmem:[%s1282_s1 + $0x58] sm:$0xff]  ;;  %v36_v18 = vld [vmem:[%s1281_s0 + $0x8] sm:$0xff] }
   0x6   :  { %143 = vmatpush.msra.mxu1 %v56_v7  ;;  %205 = vmatpush.msra.mxu2 %v709_v6  ;;  %v54_v12 = vld [vmem:[%s1282_s1 + $0x20] sm:$0xff]  ;;  %30 = vst.msk [vmem:[#allocation2 + $0x11] sm:$0x3] %vm29_vm1, %v831_v5  ;;  %v53_v17 = vld [vmem:[%s1282_s1 + $0x18] sm:$0xff]  ;;  %v688_v19 = vld [vmem:[%s1282_s1 + $0x50] sm:$0xff] }
   0x7   :  { %97 = vmatpush.msra.mxu0 %v691_v8  ;;  %v35_v15 = vld [vmem:[%s1281_s0] sm:$0xff]  ;;  %v52_v20 = vld [vmem:[%s1282_s1 + $0x10] sm:$0xff]  ;;  %39 = vst.msk [vmem:[#allocation2 + $0x9] sm:$0xff] %vm37_vm2, %v36_v18  ;;  %v685_v22 = vld [vmem:[%s1281_s0 + $0x18] sm:$0xff] }
   0x8   :  { %144 = vmatpush.msra.mxu1 %v55_v9  ;;  %206 = vmatpush.msra.mxu2 %v708_v10  ;;  %38 = vst.msk [vmem:[#allocation2 + $0x1] sm:$0xff] %vm37_vm2, %v35_v15  ;;  %v684_v21 = vld [vmem:[%s1281_s0 + $0x10] sm:$0xff]  ;;  %v705_v23 = vld [vmem:[%s1282_s1 + $0x88] sm:$0xff] }
   0x9   :  { %98 = vmatpush.msra.mxu0 %v690_v11  ;;  %43 = vst.msk [vmem:[#allocation2 + $0x13] sm:$0xff] %vm37_vm2, %v684_v21  ;;  %v687_v24 = vld [vmem:[%s1282_s1 + $0x48] sm:$0xff] }
   0xa   :  { %145 = vmatpush.msra.mxu1 %v54_v12  ;;  %207 = vmatpush.msra.mxu2 %v707_v13  ;;  %44 = vst.msk [vmem:[#allocation2 + $0x1b] sm:$0xff] %vm37_vm2, %v685_v22 }
   0xb   :  { %99 = vmatpush.msra.mxu0 %v689_v14 }
   0xc   :  { %146 = vmatpush.msra.mxu1 %v53_v17 }
   0xd   :  { %12 = vsyncpa [#allocation5], 0  ;;  %208 = vmatpush.msra.mxu2 %v706_v16  ;;  %100 = vmatpush.msra.mxu0 %v688_v19  ;;  %v51_v25 = vld [vmem:[%s1282_s1 + $0x8] sm:$0xff]  ;;  %v704_v26 = vld [vmem:[%s1282_s1 + $0x80] sm:$0xff]  ;;  %vm637_vm8 = vcmask 1041408   ;;  %vm630_vm9 = vcmask 277504  }
   0xe   :  { %147 = vmatpush.msra.mxu1 %v52_v20  ;;  %v686_v27 = vld [vmem:[%s1282_s1 + $0x40] sm:$0xff]  ;;  %v732_v32 = vld [vmem:[%s1284_s3 + $0xf8] sm:$0xff]  ;;  %v731_v34 = vld [vmem:[%s1284_s3 + $0xf0] sm:$0xff]  ;;  %s832_s29 = smov [#allocation4]   ;;  %s833_s9 = smov 128  }
   0xf   :  { %209 = vmatpush.msra.mxu2 %v705_v23  ;;  %101 = vmatpush.msra.mxu0 %v687_v24  ;;  %v50_v28 = vld [vmem:[%s1282_s1] sm:$0xff]  ;;  %v281_v33 = vld [vmem:[%s1284_s3 + $0x78] sm:$0xff]  ;;  %v280_v35 = vld [vmem:[%s1284_s3 + $0x70] sm:$0xff]  ;;  %s670_s30 = sshll.u32 %s832_s29, 4  ;;  %s834_s1 = smov 8   ;;  %s671_s30 = int_to_ptr.vmem [resolvable:$true] %s670_s30 }
  0x10   :  { %148 = vmatpush.msra.mxu1 %v51_v25  ;;  %v963_v29 = vld [vmem:[#allocation2 + $0x1] sm:$0xff]  ;;  %304 = vmatpush.msra.mxu3 %v732_v32  ;;  %v987_v36 = vld [vmem:[#allocation2 + $0xa] sm:$0xff]  ;;  %v748_v40 = vld [vmem:[%s1284_s3 + $0x178] sm:$0xff] }
  0x11   :  { %v965_v30 = vld [vmem:[#allocation2] sm:$0xff]  ;;  %210 = vmatpush.msra.mxu2 %v704_v26  ;;  %102 = vmatpush.msra.mxu0 %v686_v27  ;;  %v730_v37 = vld [vmem:[%s1284_s3 + $0xe8] sm:$0xff]  ;;  %v747_v43 = vld [vmem:[%s1284_s3 + $0x170] sm:$0xff] }
  0x12   :  { %v967_v31 = vld [vmem:[#allocation2 + $0x2] sm:$0xff]  ;;  %149 = vmatpush.msra.mxu1 %v50_v28  ;;  %694 = vmatmul.msk.f32.vlgmr.msra.gmra.mxu0 %vm37_vm2, %v963_v29  ;;  %v728_v45 = vld [vmem:[%s1284_s3 + $0xd8] sm:$0xff]  ;;  %v727_v48 = vld [vmem:[%s1284_s3 + $0xd0] sm:$0xff] }
  0x13   :  { %712 = vmatmul.msk.f32.vlgmr.msra.gmra.mxu2 %vm37_vm2, %v967_v31  ;;  %699 = vmatmul.msk.f32.vlgmr.msra.gmra.mxu1 %vm37_vm2, %v965_v30  ;;  %v992_v38 = vld [vmem:[#allocation2 + $0x9] sm:$0xff]  ;;  %v729_v42 = vld [vmem:[%s1284_s3 + $0xe0] sm:$0xff]  ;;  %v277_v47 = vld [vmem:[%s1284_s3 + $0x58] sm:$0xff] }
  0x14   :  { %336 = vmatpush.msrb.mxu0 %v281_v33  ;;  %783 = vmatpush.msrb.mxu2 %v281_v33  ;;  %v994_v39 = vld [vmem:[#allocation2 + $0x8] sm:$0xff]  ;;  %v278_v44 = vld [vmem:[%s1284_s3 + $0x60] sm:$0xff]  ;;  %v1029_v49 = vld [vmem:[#allocation2 + $0x12] sm:$0xff] }
  0x15   :  { %305 = vmatpush.msra.mxu3 %v731_v34  ;;  %v279_v41 = vld [vmem:[%s1284_s3 + $0x68] sm:$0xff]  ;;  %390 = vmatpush.msrb.mxu1 %v748_v40  ;;  %v276_v50 = vld [vmem:[%s1284_s3 + $0x50] sm:$0xff]  ;;  %v1050_v55 = vld [vmem:[#allocation2 + $0x1a] sm:$0xff] }
  0x16   :  { %337 = vmatpush.msrb.mxu0 %v280_v35  ;;  %784 = vmatpush.msrb.mxu2 %v280_v35  ;;  %v746_v46 = vld [vmem:[%s1284_s3 + $0x168] sm:$0xff]  ;;  %v1034_v51 = vld [vmem:[#allocation2 + $0x11] sm:$0xff]  ;;  %v1052_v56 = vld [vmem:[#allocation2 + $0x19] sm:$0xff] }
  0x17   :  { %306 = vmatpush.msra.mxu3 %v730_v37  ;;  %391 = vmatpush.msrb.mxu1 %v747_v43  ;;  %v1036_v52 = vld [vmem:[#allocation2 + $0x10] sm:$0xff]  ;;  %v726_v53 = vld [vmem:[%s1284_s3 + $0xc8] sm:$0xff]  ;;  %v1054_v57 = vld [vmem:[#allocation2 + $0x18] sm:$0xff] }
  0x18   :  { %338 = vmatpush.msrb.mxu0 %v279_v41  ;;  %785 = vmatpush.msrb.mxu2 %v279_v41  ;;  %v275_v54 = vld [vmem:[%s1284_s3 + $0x48] sm:$0xff]  ;;  %v170_v58 = vld [vmem:[#allocation2 + $0x22] sm:$0x3]  ;;  %v49_v60 = vld [vmem:[#allocation2 + $0x20] sm:$0x3] }
  0x19   :  { %307 = vmatpush.msra.mxu3 %v729_v42  ;;  %392 = vmatpush.msrb.mxu1 %v746_v46  ;;  %v62_v59 = vld [vmem:[#allocation2 + $0x21] sm:$0x3]  ;;  %v724_v62 = vld [vmem:[%s1284_s3 + $0xb8] sm:$0xff]  ;;  %v723_v63 = vld [vmem:[%s1284_s3 + $0xb0] sm:$0xff] }
  0x1a   :  { %695 = vmatmul.msk.f32.gmra.mxu0 %vm37_vm2, %v992_v38  ;;  %786 = vmatpush.msrb.mxu2 %v278_v44  ;;  %v725_v61 = vld [vmem:[%s1284_s3 + $0xc0] sm:$0xff]  ;;  %v722_v2 = vld [vmem:[%s1284_s3 + $0xa8] sm:$0xff]  ;;  %v273_v4 = vld [vmem:[%s1284_s3 + $0x38] sm:$0xff] }
  0x1b   :  { %713 = vmatmul.msk.f32.gmra.mxu2 %vm37_vm2, %v987_v36  ;;  %700 = vmatmul.msk.f32.gmra.mxu1 %vm37_vm2, %v994_v39  ;;  %v274_v0 = vld [vmem:[%s1284_s3 + $0x40] sm:$0xff]  ;;  %v744_v5 = vld [vmem:[%s1284_s3 + $0x158] sm:$0xff]  ;;  %v272_v7 = vld [vmem:[%s1284_s3 + $0x30] sm:$0xff] }
  0x1c   :  { %339 = vmatpush.msrb.mxu0 %v278_v44  ;;  %308 = vmatpush.msra.mxu3 %v728_v45  ;;  %v745_v1 = vld [vmem:[%s1284_s3 + $0x160] sm:$0xff]  ;;  %v720_v6 = vld [vmem:[%s1284_s3 + $0x98] sm:$0xff]  ;;  %v743_v8 = vld [vmem:[%s1284_s3 + $0x150] sm:$0xff] }
  0x1d   :  { %787 = vmatpush.msrb.mxu2 %v277_v47  ;;  %393 = vmatpush.msrb.mxu1 %v745_v1  ;;  %v721_v3 = vld [vmem:[%s1284_s3 + $0xa0] sm:$0xff]  ;;  %v719_v9 = vld [vmem:[%s1284_s3 + $0x90] sm:$0xff]  ;;  %v271_v10 = vld [vmem:[%s1284_s3 + $0x28] sm:$0xff] }
  0x1e   :  { %340 = vmatpush.msrb.mxu0 %v277_v47  ;;  %309 = vmatpush.msra.mxu3 %v727_v48  ;;  %v742_v11 = vld [vmem:[%s1284_s3 + $0x148] sm:$0xff]  ;;  %v270_v13 = vld [vmem:[%s1284_s3 + $0x20] sm:$0xff]  ;;  %v269_v16 = vld [vmem:[%s1284_s3 + $0x18] sm:$0xff] }
  0x1f   :  { %788 = vmatpush.msrb.mxu2 %v276_v50  ;;  %394 = vmatpush.msrb.mxu1 %v744_v5  ;;  %v718_v12 = vld [vmem:[%s1284_s3 + $0x88] sm:$0xff]  ;;  %v741_v14 = vld [vmem:[%s1284_s3 + $0x140] sm:$0xff]  ;;  %v740_v17 = vld [vmem:[%s1284_s3 + $0x138] sm:$0xff] }
  0x20   :  { %341 = vmatpush.msrb.mxu0 %v276_v50  ;;  %310 = vmatpush.msra.mxu3 %v726_v53  ;;  %v717_v15 = vld [vmem:[%s1284_s3 + $0x80] sm:$0xff]  ;;  %v268_v18 = vld [vmem:[%s1284_s3 + $0x10] sm:$0xff]  ;;  %v267_v20 = vld [vmem:[%s1284_s3 + $0x8] sm:$0xff] }
  0x21   :  { %789 = vmatpush.msrb.mxu2 %v275_v54  ;;  %395 = vmatpush.msrb.mxu1 %v743_v8  ;;  %v739_v19 = vld [vmem:[%s1284_s3 + $0x130] sm:$0xff]  ;;  %v738_v21 = vld [vmem:[%s1284_s3 + $0x128] sm:$0xff]  ;;  %v266_v22 = vld [vmem:[%s1284_s3] sm:$0xff] }
  0x22   :  { %696 = vmatmul.msk.f32.gmra.mxu0 %vm37_vm2, %v1034_v51  ;;  %311 = vmatpush.msra.mxu3 %v725_v61  ;;  %v737_v23 = vld [vmem:[%s1284_s3 + $0x120] sm:$0xff]  ;;  %v736_v24 = vld [vmem:[%s1284_s3 + $0x118] sm:$0xff]  ;;  %v735_v25 = vld [vmem:[%s1284_s3 + $0x110] sm:$0xff] }
  0x23   :  { %714 = vmatmul.msk.f32.gmra.mxu2 %vm37_vm2, %v1029_v49  ;;  %701 = vmatmul.msk.f32.gmra.mxu1 %vm37_vm2, %v1036_v52  ;;  %v734_v26 = vld [vmem:[%s1284_s3 + $0x108] sm:$0xff]  ;;  %v733_v27 = vld [vmem:[%s1284_s3 + $0x100] sm:$0xff]  ;;  %v756_v48 = vld [vmem:[%s1285_s4 + $0x78] sm:$0xff] }
  0x24   :  { %342 = vmatpush.msrb.mxu0 %v275_v54  ;;  %312 = vmatpush.msra.mxu3 %v724_v62  ;;  %v1161_v34 = vld [vmem:[%s1283_s2] ss:$0 sm:$0xff]  ;;  %v439_v50 = vld [vmem:[%s1285_s4 + $0x38] sm:$0xff]  ;;  %v755_v53 = vld [vmem:[%s1285_s4 + $0x70] sm:$0xff]  ;;  %s672_s2 = sshll.u32 %s1288_s7, 4  ;;  %s673_s2 = int_to_ptr.hbm [resolvable:$true] %s672_s2 }
  0x25   :  { %790 = vmatpush.msrb.mxu2 %v274_v0  ;;  %396 = vmatpush.msrb.mxu1 %v742_v11  ;;  %v438_v54 = vld [vmem:[%s1285_s4 + $0x30] sm:$0xff]  ;;  %v754_v61 = vld [vmem:[%s1285_s4 + $0x68] sm:$0xff]  ;;  %v753_v1 = vld [vmem:[%s1285_s4 + $0x60] sm:$0xff] }
  0x26   :  { %313 = vmatpush.msra.mxu3 %v723_v63  ;;  %343 = vmatpush.msrb.mxu0 %v274_v0  ;;  %v437_v62 = vld [vmem:[%s1285_s4 + $0x28] sm:$0xff]  ;;  %v435_v8 = vld [vmem:[%s1285_s4 + $0x18] sm:$0xff]  ;;  %v434_v11 = vld [vmem:[%s1285_s4 + $0x10] sm:$0xff] }
  0x27   :  { %791 = vmatpush.msrb.mxu2 %v273_v4  ;;  %397 = vmatpush.msrb.mxu1 %v741_v14 }
  0x28   :  { %314 = vmatpush.msra.mxu3 %v722_v2  ;;  %344 = vmatpush.msrb.mxu0 %v273_v4  ;;  %v436_v2 = vld [vmem:[%s1285_s4 + $0x20] sm:$0xff] }
  0x29   :  { %792 = vmatpush.msrb.mxu2 %v272_v7  ;;  %398 = vmatpush.msrb.mxu1 %v740_v17  ;;  %v750_v17 = vld [vmem:[%s1285_s4 + $0x48] sm:$0xff] }
  0x2a   :  { %697 = vmatmul.msk.f32.gmra.mxu0 %vm37_vm2, %v1052_v56  ;;  %315 = vmatpush.msra.mxu3 %v721_v3 }
  0x2b   :  { %715 = vmatmul.msk.f32.gmra.mxu2 %vm37_vm2, %v1050_v55  ;;  %702 = vmatmul.msk.f32.gmra.mxu1 %vm37_vm2, %v1054_v57 }
  0x2c   :  { %316 = vmatpush.msra.mxu3 %v720_v6  ;;  %345 = vmatpush.msrb.mxu0 %v272_v7  ;;  %v752_v7 = vld [vmem:[%s1285_s4 + $0x58] sm:$0xff] }
  0x2d   :  { %793 = vmatpush.msrb.mxu2 %v271_v10  ;;  %399 = vmatpush.msrb.mxu1 %v739_v19 }
  0x2e   :  { %317 = vmatpush.msra.mxu3 %v719_v9  ;;  %346 = vmatpush.msrb.mxu0 %v271_v10  ;;  %v774_v9 = vld [vmem:[%s1285_s4 + $0xb8] sm:$0xff]  ;;  %v751_v10 = vld [vmem:[%s1285_s4 + $0x50] sm:$0xff] }
  0x2f   :  { %794 = vmatpush.msrb.mxu2 %v270_v13  ;;  %400 = vmatpush.msrb.mxu1 %v738_v21  ;;  %v749_v21 = vld [vmem:[%s1285_s4 + $0x40] sm:$0xff] }
  0x30   :  { %318 = vmatpush.msra.mxu3 %v718_v12  ;;  %347 = vmatpush.msrb.mxu0 %v270_v13  ;;  %v773_v12 = vld [vmem:[%s1285_s4 + $0xb0] sm:$0xff] }
  0x31   :  { %795 = vmatpush.msrb.mxu2 %v269_v16  ;;  %401 = vmatpush.msrb.mxu1 %v737_v23 }
  0x32   :  { %698 = vmatmul.msk.f32.gmra.mxu0 %vm37_vm2, %v62_v59  ;;  %319 = vmatpush.msra.mxu3 %v717_v15 }
  0x33   :  { %716 = vmatmul.msk.f32.gmra.mxu2 %vm37_vm2, %v170_v58  ;;  %703 = vmatmul.msk.f32.gmra.mxu1 %vm37_vm2, %v49_v60 }
  0x34   :  { %348 = vmatpush.msrb.mxu0 %v269_v16  ;;  %796 = vmatpush.msrb.mxu2 %v268_v18  ;;  %v772_v16 = vld [vmem:[%s1285_s4 + $0xa8] sm:$0xff] }
  0x35   :  { %402 = vmatpush.msrb.mxu1 %v736_v24  ;;  %524 = vmatpush.msrb.mxu3 %v439_v50  ;;  %v767_v50 = vld [vmem:[%s1285_s4 + $0x80] sm:$0xff] }
  0x36   :  { %349 = vmatpush.msrb.mxu0 %v268_v18  ;;  %797 = vmatpush.msrb.mxu2 %v267_v20  ;;  %v433_v18 = vld [vmem:[%s1285_s4 + $0x8] sm:$0xff] }
  0x37   :  { %403 = vmatpush.msrb.mxu1 %v735_v25  ;;  %525 = vmatpush.msrb.mxu3 %v438_v54 }
  0x38   :  { %350 = vmatpush.msrb.mxu0 %v267_v20  ;;  %798 = vmatpush.msrb.mxu2 %v266_v22 }
  0x39   :  { %404 = vmatpush.msrb.mxu1 %v734_v26  ;;  %526 = vmatpush.msrb.mxu3 %v437_v62  ;;  %v771_v26 = vld [vmem:[%s1285_s4 + $0xa0] sm:$0xff] }
  0x3a   :  { %351 = vmatpush.msrb.mxu0 %v266_v22  ;;  %477 = vmatpush.msra.mxu2 %v756_v48  ;;  %v432_v22 = vld [vmem:[%s1285_s4] sm:$0xff] }
  0x3b   :  { %405 = vmatpush.msrb.mxu1 %v733_v27  ;;  %527 = vmatpush.msrb.mxu3 %v436_v2 }
  0x3c   :  { %478 = vmatpush.msra.mxu2 %v755_v53  ;;  %585 = vmatpush.msra.mxu0 %v774_v9 }
  0x3d   :  { %528 = vmatpush.msrb.mxu3 %v435_v8 }
  0x3e   :  { %479 = vmatpush.msra.mxu2 %v754_v61  ;;  %586 = vmatpush.msra.mxu0 %v773_v12 }
  0x3f   :  { %529 = vmatpush.msrb.mxu3 %v434_v11 }
  0x40   :  { %480 = vmatpush.msra.mxu2 %v753_v1  ;;  %587 = vmatpush.msra.mxu0 %v772_v16 }
  0x41   :  { %530 = vmatpush.msrb.mxu3 %v433_v18 }
  0x42   :  { %481 = vmatpush.msra.mxu2 %v752_v7  ;;  %588 = vmatpush.msra.mxu0 %v771_v26 }
  0x43   :  { %531 = vmatpush.msrb.mxu3 %v432_v22 }
  0x44   :  { %482 = vmatpush.msra.mxu2 %v751_v10 }
  0x46   :  { %483 = vmatpush.msra.mxu2 %v750_v17 }
  0x48   :  { %484 = vmatpush.msra.mxu2 %v749_v21 }
  0x8f   :  { %v104_v28 = vpop.f32.mrf.mxu0 }
  0x90   :  { %v151_v32 = vpop.f32.mrf.mxu1 }
  0x91   :  { %v152_v33 = vadd.f32 %v151_v32, %v104_v28  ;;  %v770_v32 = vld [vmem:[%s1285_s4 + $0x98] sm:$0xff] }
  0x92   :  { %589 = vmatpush.msra.mxu0 %v770_v32 }
  0x96   :  { %v212_v35 = vpop.f32.mrf.mxu2 }
  0x97   :  { %v227_v37 = vadd.f32 %v212_v35, %v152_v33  ;;  %v107_v41 = vpop.f32.mrf.mxu0 }
  0x98   :  { %v154_v42 = vpop.f32.mrf.mxu1 }
  0x99   :  { %v236_v40 = vadd.f32 %v1161_v34, %v227_v37  ;;  %v155_v44 = vadd.f32 %v154_v42, %v107_v41 }
  0x9b   :  { %vm241_vm3 = vcmp.ge.f32.partialorder %v236_v40, 0.0  ;;  %v246_v43 = vmul.f32 0.2, %v236_v40 }
  0x9d   :  { %v251_v45 = vsel %vm241_vm3, %v236_v40, %v246_v43  ;;  %v769_v40 = vld [vmem:[%s1285_s4 + $0x90] sm:$0xff]  ;;  %v768_v43 = vld [vmem:[%s1285_s4 + $0x88] sm:$0xff] }
  0x9e   :  { %256 = vst [vmem:[#allocation3 + $0x1] sm:$0xff] %v251_v45  ;;  %v215_v46 = vpop.f32.mrf.mxu2  ;;  %320 = vmatmul.f32.vlgmr.msra.gmra.mxu3 %v251_v45  ;;  %590 = vmatpush.msra.mxu0 %v769_v40 }
  0x9f   :  { %v228_v47 = vadd.f32 %v215_v46, %v155_v44  ;;  %v110_v59 = vpop.f32.mrf.mxu0 }
  0xa0   :  { %v157_v60 = vpop.f32.mrf.mxu1  ;;  %591 = vmatpush.msra.mxu0 %v768_v43 }
  0xa1   :  { %v237_v58 = vadd.f32 %v1161_v34, %v228_v47  ;;  %v158_v0 = vadd.f32 %v157_v60, %v110_v59 }
  0xa2   :  { %592 = vmatpush.msra.mxu0 %v767_v50 }
  0xa3   :  { %vm242_vm4 = vcmp.ge.f32.partialorder %v237_v58, 0.0  ;;  %v247_v63 = vmul.f32 0.2, %v237_v58 }
  0xa5   :  { %v252_v3 = vsel %vm242_vm4, %v237_v58, %v247_v63  ;;  %v261_v4 = vld [vmem:[#allocation3] sm:$0xff] }
  0xa6   :  { %257 = vst [vmem:[#allocation3 + $0x9] sm:$0xff] %v252_v3  ;;  %v218_v5 = vpop.f32.mrf.mxu2  ;;  %352 = vmatmul.f32.vlgmr.msrb.gmra.mxu0 %v261_v4  ;;  %323 = vmatmul.f32.gmra.mxu3 %v252_v3 }
  0xa7   :  { %v229_v6 = vadd.f32 %v218_v5, %v158_v0  ;;  %v113_v14 = vpop.f32.mrf.mxu0 }
  0xa8   :  { %v160_v15 = vpop.f32.mrf.mxu1 }
  0xa9   :  { %v238_v13 = vadd.f32 %v1161_v34, %v229_v6  ;;  %v161_v20 = vadd.f32 %v160_v15, %v113_v14 }
  0xab   :  { %vm243_vm5 = vcmp.ge.f32.partialorder %v238_v13, 0.0  ;;  %v248_v19 = vmul.f32 0.2, %v238_v13 }
  0xad   :  { %v253_v23 = vsel %vm243_vm5, %v238_v13, %v248_v19  ;;  %v262_v24 = vld [vmem:[#allocation3 + $0x8] sm:$0xff] }
  0xae   :  { %v368_v25 = vld [vmem:[#allocation3 + $0x2] sm:$0xff]  ;;  %258 = vst [vmem:[#allocation3 + $0x11] sm:$0xfc] %v253_v23  ;;  %v221_v27 = vpop.f32.mrf.mxu2  ;;  %355 = vmatmul.f32.gmra.mxu0 %v262_v24  ;;  %v369_v48 = vld [vmem:[#allocation3 + $0xa] sm:$0xff] }
  0xaf   :  { %406 = vmatmul.f32.vlgmr.msrb.gmra.mxu1 %v368_v25  ;;  %v230_v28 = vadd.f32 %v221_v27, %v161_v20  ;;  %v116_v35 = vpop.f32.mrf.mxu0 }
  0xb0   :  { %v163_v37 = vpop.f32.mrf.mxu1 }
  0xb1   :  { %v239_v33 = vadd.f32 %v1161_v34, %v230_v28  ;;  %v164_v42 = vadd.f32 %v163_v37, %v116_v35 }
  0xb3   :  { %vm244_vm6 = vcmp.ge.f32.partialorder %v239_v33, 0.0  ;;  %v249_v41 = vmul.f32 0.2, %v239_v33 }
  0xb5   :  { %v254_v44 = vsel %vm244_vm6, %v239_v33, %v249_v41  ;;  %v284_v45 = vld [vmem:[#allocation3 + $0x11] sm:$0xff] }
  0xb6   :  { %v263_v46 = vld [vmem:[#allocation3 + $0x10] sm:$0xff]  ;;  %259 = vst [vmem:[#allocation3 + $0x19] sm:$0xff] %v254_v44  ;;  %v224_v47 = vpop.f32.mrf.mxu2  ;;  %326 = vmatmul.f32.gmra.mxu3 %v284_v45  ;;  %775 = vmatmul.msk.f32.vlgmr.msra.gmra.mxu0 %vm37_vm2, %v967_v31 }
  0xb7   :  { %358 = vmatmul.f32.vlgmr.msrb.gmra.mxu2 %v263_v46  ;;  %v231_v53 = vadd.f32 %v224_v47, %v164_v42  ;;  %409 = vmatmul.f32.gmra.mxu1 %v369_v48  ;;  %v804_v47 = vld [vmem:[%s1286_s5] ss:$0 sm:$0xff] }
  0xb9   :  { %v240_v54 = vadd.f32 %v1161_v34, %v231_v53 }
  0xbb   :  { %vm245_vm7 = vcmp.ge.f32.partialorder %v240_v54, 0.0  ;;  %v250_v58 = vmul.f32 0.2, %v240_v54 }
  0xbd   :  { %v255_v59 = vsel %vm245_vm7, %v240_v54, %v250_v58  ;;  %v264_v60 = vld [vmem:[#allocation3 + $0x18] sm:$0xff] }
  0xbe   :  { %v370_v61 = vld [vmem:[#allocation3 + $0x12] sm:$0xff]  ;;  %260 = vst [vmem:[#allocation3 + $0x21] sm:$0x3] %v255_v59  ;;  %329 = vmatmul.f32.gmra.mxu3 %v254_v44  ;;  %776 = vmatmul.msk.f32.gmra.mxu0 %vm37_vm2, %v987_v36  ;;  %v552_v36 = vld [vmem:[#allocation2 + $0x22] sm:$0x3] }
  0xbf   :  { %361 = vmatmul.f32.gmra.mxu2 %v264_v60  ;;  %412 = vmatmul.f32.gmra.mxu1 %v370_v61 }
  0xc5   :  { %v286_v62 = vld [vmem:[#allocation3 + $0x21] sm:$0x3] }
  0xc6   :  { %v265_v63 = vld [vmem:[#allocation3 + $0x20] sm:$0x3]  ;;  %332 = vmatmul.f32.gmra.mxu3 %v286_v62  ;;  %777 = vmatmul.msk.f32.gmra.mxu0 %vm37_vm2, %v1029_v49  ;;  %v372_v31 = vld [vmem:[#allocation3 + $0x22] sm:$0x3] }
  0xc7   :  { %v371_v0 = vld [vmem:[#allocation3 + $0x1a] sm:$0xff]  ;;  %364 = vmatmul.f32.gmra.mxu2 %v265_v63 }
  0xc8   :  { %415 = vmatmul.f32.gmra.mxu1 %v371_v0 }
  0xce   :  { %762 = vmatmul.msk.f32.vlgmr.msrb.gmra.mxu3 %vm37_vm2, %v965_v30  ;;  %778 = vmatmul.msk.f32.gmra.mxu0 %vm37_vm2, %v1050_v55  ;;  %v431_v30 = vld [vmem:[#allocation2 + $0x20] sm:$0x3] }
  0xcf   :  { %757 = vmatmul.msk.f32.vlgmr.msra.gmra.mxu2 %vm37_vm2, %v963_v29  ;;  %v444_v29 = vld [vmem:[#allocation2 + $0x21] sm:$0x3] }
  0xd0   :  { %418 = vmatmul.f32.gmra.mxu1 %v372_v31 }
  0xd6   :  { %763 = vmatmul.msk.f32.gmra.mxu3 %vm37_vm2, %v994_v39  ;;  %779 = vmatmul.msk.f32.gmra.mxu0 %vm37_vm2, %v552_v36  ;;  %v628_v36 = vld [vmem:[%s1287_s6] sm:$0xff] }
  0xd7   :  { %758 = vmatmul.msk.f32.gmra.mxu2 %vm37_vm2, %v992_v38 }
  0xde   :  { %764 = vmatmul.msk.f32.gmra.mxu3 %vm37_vm2, %v1036_v52 }
  0xdf   :  { %759 = vmatmul.msk.f32.gmra.mxu2 %vm37_vm2, %v1034_v51 }
  0xe6   :  { %765 = vmatmul.msk.f32.gmra.mxu3 %vm37_vm2, %v1054_v57 }
  0xe7   :  { %760 = vmatmul.msk.f32.gmra.mxu2 %vm37_vm2, %v1052_v56 }
  0xee   :  { %766 = vmatmul.msk.f32.gmra.mxu3 %vm37_vm2, %v431_v30 }
  0xef   :  { %761 = vmatmul.msk.f32.gmra.mxu2 %vm37_vm2, %v444_v29  ;;  %v629_v29 = vld [vmem:[%s1287_s6 + $0x8] sm:$0xff] }
 0x121   :  { %v321_v38 = vpop.f32.mrf.mxu3 }
 0x123   :  { %v353_v49 = vpop.f32.mrf.mxu0 }
 0x124   :  { %v354_v48 = vadd.f32 %v353_v49, %v321_v38 }
 0x129   :  { %v324_v39 = vpop.f32.mrf.mxu3 }
 0x12b   :  { %v356_v34 = vpop.f32.mrf.mxu0 }
 0x12c   :  { %v407_v2 = vpop.f32.mrf.mxu1  ;;  %v357_v42 = vadd.f32 %v356_v34, %v324_v39 }
 0x12d   :  { %v422_v59 = vadd.f32 %v407_v2, %v354_v48 }
 0x133   :  { %v594_v3 = vpop.f32.mrf.mxu0 }
 0x134   :  { %v410_v6 = vpop.f32.mrf.mxu1 }
 0x135   :  { %v423_v50 = vadd.f32 %v410_v6, %v357_v42 }
 0x139   :  { %v327_v55 = vpop.f32.mrf.mxu3 }
 0x13a   :  { %v359_v51 = vpop.f32.mrf.mxu2 }
 0x13b   :  { %v597_v7 = vpop.f32.mrf.mxu0  ;;  %v360_v26 = vadd.f32 %v359_v51, %v327_v55 }
 0x13c   :  { %v413_v10 = vpop.f32.mrf.mxu1 }
 0x13d   :  { %v424_v43 = vadd.f32 %v413_v10, %v360_v26 }
 0x141   :  { %v330_v1 = vpop.f32.mrf.mxu3 }
 0x142   :  { %v362_v52 = vpop.f32.mrf.mxu2 }
 0x143   :  { %v600_v11 = vpop.f32.mrf.mxu0  ;;  %v363_v19 = vadd.f32 %v362_v52, %v330_v1 }
 0x145   :  { %v416_v14 = vpop.f32.mrf.mxu1 }
 0x146   :  { %v425_v33 = vadd.f32 %v416_v14, %v363_v19 }
 0x149   :  { %v333_v56 = vpop.f32.mrf.mxu3 }
 0x14a   :  { %v365_v4 = vpop.f32.mrf.mxu2 }
 0x14b   :  { %v603_v15 = vpop.f32.mrf.mxu0  ;;  %v366_v20 = vadd.f32 %v365_v4, %v333_v56 }
 0x14d   :  { %v419_v21 = vpop.f32.mrf.mxu1 }
 0x14e   :  { %v426_v35 = vadd.f32 %v419_v21, %v366_v20 }
 0x151   :  { %v533_v57 = vpop.f32.mrf.mxu3 }
 0x152   :  { %v486_v5 = vpop.f32.mrf.mxu2 }
 0x153   :  { %v606_v23 = vpop.f32.mrf.mxu0  ;;  %v534_v37 = vadd.f32 %v533_v57, %v486_v5 }
 0x155   :  { %v609_v53 = vadd.f32 %v594_v3, %v534_v37 }
 0x157   :  { %v614_v62 = vadd.f32 %v609_v53, %v422_v59 }
 0x159   :  { %v536_v9 = vpop.f32.mrf.mxu3  ;;  %v623_v31 = vadd.f32 %v804_v47, %v614_v62 }
 0x15a   :  { %v489_v8 = vpop.f32.mrf.mxu2 }
 0x15b   :  { %v537_v27 = vadd.f32 %v536_v9, %v489_v8 }
 0x15d   :  { %v610_v44 = vadd.f32 %v597_v7, %v537_v27 }
 0x15f   :  { %v615_v60 = vadd.f32 %v610_v44, %v423_v50 }
 0x161   :  { %v539_v13 = vpop.f32.mrf.mxu3  ;;  %v624_v0 = vadd.f32 %v804_v47, %v615_v60 }
 0x162   :  { %v492_v12 = vpop.f32.mrf.mxu2 }
 0x163   :  { %v540_v22 = vadd.f32 %v539_v13, %v492_v12 }
 0x165   :  { %v611_v40 = vadd.f32 %v600_v11, %v540_v22 }
 0x167   :  { %v616_v54 = vadd.f32 %v611_v40, %v424_v43 }
 0x169   :  { %v542_v17 = vpop.f32.mrf.mxu3  ;;  %v625_v63 = vadd.f32 %v804_v47, %v616_v54 }
 0x16a   :  { %v495_v16 = vpop.f32.mrf.mxu2 }
 0x16b   :  { %v543_v18 = vadd.f32 %v542_v17, %v495_v16 }
 0x16d   :  { %v612_v28 = vadd.f32 %v603_v15, %v543_v18 }
 0x16f   :  { %v617_v45 = vadd.f32 %v612_v28, %v425_v33 }
 0x171   :  { %v545_v25 = vpop.f32.mrf.mxu3  ;;  %v626_v61 = vadd.f32 %v804_v47, %v617_v45 }
 0x172   :  { %v498_v24 = vpop.f32.mrf.mxu2 }
 0x173   :  { %v546_v32 = vadd.f32 %v545_v25, %v498_v24 }
 0x175   :  { %v613_v41 = vadd.f32 %v606_v23, %v546_v32 }
 0x177   :  { %v618_v46 = vadd.f32 %v613_v41, %v426_v35 }
 0x179   :  { %v627_v58 = vadd.f32 %v804_v47, %v618_v46 }
 0x17b   :  { %780 = vmatpush.msk.msra.mxu1 %vm637_vm8, %v627_v58 }
 0x17d   :  { %653 = vmatpush.msra.mxu1 %v626_v61 }
 0x17f   :  { %654 = vmatpush.msra.mxu1 %v625_v63 }
 0x181   :  { %655 = vmatpush.msra.mxu1 %v624_v0 }
 0x183   :  { %656 = vmatpush.msra.mxu1 %v623_v31 }
 0x184   :  { %781 = vmatmul.msk.f32.vlgmr.msra.gmra.mxu1 %vm630_vm9, %v628_v36 }
 0x18c   :  { %782 = vmatmul.msk.f32.gmra.mxu1 %vm630_vm9, %v629_v29 }
 0x201   :  { %v658_v30 = vpop.f32.mrf.mxu1 }
 0x202   :  { %664 = vst.msk [vmem:[#allocation4] sm:$0xff] %vm37_vm2, %v658_v30 }
 0x209   :  { %v661_v38 = vpop.f32.mrf.mxu1 }
 0x20a   :  { %665 = vst.msk [vmem:[#allocation4 + $0x8] sm:$0xff] %vm37_vm2, %v661_v38 }
 0x20b   :  { %678 = dma.vmem_to_hbm [thread:$0]  %s671_s30, 256, %s673_s2, [#allocation5], %s833_s9, %s833_s9, %s834_s1  }
 0x20c   :  { %829 = dma.done.wait [#allocation5], 256  }
 0x20d   :  { %830 = vsyncadd [#allocation5], 4294967040 }
 0x20e   :  { %683 = vsyncpa [#allocation5], 1 }

</bundles_post_ra>
